<compile_context>
chip_gen: v7x
topology: tpu7x:2x2x1
jax: 0.10.0
libtpu: 0.0.40
codegen_flags: <defaults>
</compile_context>

<pallas_src>
import math
import jax
import jax.numpy as jnp
from jax import lax
from jax.experimental import pallas as pl
from jax.experimental.pallas import tpu as pltpu


# TODO(synk): config.seq_output_act_fn is not specified in the snippet; default
# to GELU (tanh approximation). "gelu_exact" / "relu" / "tanh" / "identity"
# are also supported ("gelu_exact" matches HF ACT2FN["gelu"] erf semantics).
def _gelu_tanh(x):
    c = math.sqrt(2.0 / math.pi)
    return 0.5 * x * (1.0 + jnp.tanh(c * (x + 0.044715 * x * x * x)))


def _gelu_exact(x):
    return 0.5 * x * (1.0 + lax.erf(x * (1.0 / math.sqrt(2.0))))


_ACTS = {
    "gelu": _gelu_tanh,
    "gelu_exact": _gelu_exact,
    "relu": lambda x: jnp.maximum(x, 0.0),
    "tanh": jnp.tanh,
    "identity": lambda x: x,
}


def _round_up(x: int, m: int) -> int:
    return ((x + m - 1) // m) * m


def _make_merger_kernel(act_name: str):
    act = _ACTS[act_name]

    def kernel(hs_ref, it_ref, w1_ref, w2_ref, b_ref, out_ref):
        # Cast activations to bf16 in-register (no extra HBM pass); MXU dots
        # with f32 accumulation.
        hs = hs_ref[...].astype(jnp.bfloat16)
        it = it_ref[...].astype(jnp.bfloat16)
        acc = jnp.dot(hs, w1_ref[...], preferred_element_type=jnp.float32)
        acc = acc + jnp.dot(it, w2_ref[...], preferred_element_type=jnp.float32)
        acc = acc + b_ref[...]                     # f32 bias, broadcast over rows
        # activation in f32 on the VPU/EUP; dropout = identity (eval mode)
        # TODO(synk): training-mode dropout would need pltpu.prng_seed/_random_bits.
        out_ref[...] = act(acc).astype(out_ref.dtype)

    return kernel


def prepare_merger_params(params, *, weight_block_budget_bytes: int = 16 << 20):
    """One-time weight prep (hoist out of the per-call path).

    params: {'w': [D, 2D] (nn.Linear convention, y = x @ w.T + b), 'b': [D]}
    Returns dict with bf16 W1^T / W2^T padded to a lane-aligned N dimension,
    an f32 bias row, plus the chosen column tile.
    """
    w = jnp.asarray(params["w"])
    b = jnp.asarray(params["b"])
    D = b.shape[0]
    assert w.shape == (D, 2 * D)

    d128 = _round_up(D, 128)
    # Keep each (W1 + W2) column block comfortably inside VMEM (v7x: 64 MiB
    # physical).  If the full-width blocks are small enough, use a single
    # column tile; otherwise tile N in 512-lane chunks.
    if 2 * D * d128 * 2 <= weight_block_budget_bytes:
        tn, d_pad = d128, d128
    else:
        tn = 512
        d_pad = _round_up(D, tn)

    w1_t = jnp.zeros((D, d_pad), jnp.bfloat16).at[:, :D].set(
        w[:, :D].T.astype(jnp.bfloat16))
    w2_t = jnp.zeros((D, d_pad), jnp.bfloat16).at[:, :D].set(
        w[:, D:].T.astype(jnp.bfloat16))
    bias = jnp.zeros((1, d_pad), jnp.float32).at[0, :D].set(
        b.astype(jnp.float32))
    return {"w1_t": w1_t, "w2_t": w2_t, "b": bias, "d_model": D, "col_tile": tn}


def _pick_row_tile(L: int, D: int, in_itemsize: int,
                   d_pad: int, out_itemsize: int) -> int:
    """Row tile targeting ~4 MiB of activation+output HBM traffic per step."""
    l8 = _round_up(L, 8)
    if l8 <= 32:
        return l8                                   # tiny inputs: one small step
    bytes_per_row = 2 * D * in_itemsize + d_pad * out_itemsize
    tl = (4 << 20) // max(bytes_per_row, 1)
    tl = max(128, min(tl, 2048))
    tl = (tl // 16) * 16                            # bf16 sublane packing
    if tl >= l8:
        tl = _round_up(pl.cdiv(l8, 2), 16)          # >=2 steps for 2-TC chips
    else:
        n = pl.cdiv(l8, tl)
        tl = _round_up(pl.cdiv(l8, n), 16)          # rebalance -> minimal padding
    return max(tl, 16)


def _vmem_limit_bytes(tl: int, D: int, in_itemsize: int,
                      tn: int, out_itemsize: int) -> int:
    act_tiles = 2 * (2 * tl * D * in_itemsize)      # hs + it, double-buffered
    out_tiles = 2 * (tl * tn * out_itemsize)        # out, double-buffered
    w_tiles = 2 * (2 * D * tn * 2 + tn * 4)         # W1 + W2 (bf16) + bias (f32)
    need = act_tiles + out_tiles + w_tiles
    need = need + need // 4 + (2 << 20)             # slack for compiler scratch
    return int(min(max(need, 32 << 20), 64 << 20))  # raise v5e's 16 MiB default


def merger_forward(prepared, hidden_states, input_tensor, *,
                   act_fn: str = "gelu", out_dtype=None):
    """prepared: output of prepare_merger_params (call once, reuse).
    hidden_states / input_tensor: [L, D].  Returns [L, D] in `out_dtype`
    (defaults to the input dtype)."""
    D = prepared["d_model"]
    L = hidden_states.shape[0]
    assert hidden_states.shape == (L, D)
    assert input_tensor.shape == (L, D)

    w1_t, w2_t, bias = prepared["w1_t"], prepared["w2_t"], prepared["b"]
    d_pad = w1_t.shape[1]
    tn = prepared["col_tile"]

    out_dtype = hidden_states.dtype if out_dtype is None else jnp.dtype(out_dtype)
    in_itemsize = hidden_states.dtype.itemsize
    out_itemsize = jnp.dtype(out_dtype).itemsize

    tl = _pick_row_tile(L, D, in_itemsize, d_pad, out_itemsize)
    l_pad = _round_up(L, tl)
    if l_pad != L:
        pad = ((0, l_pad - L), (0, 0))
        hidden_states = jnp.pad(hidden_states, pad)
        input_tensor = jnp.pad(input_tensor, pad)

    n_rows = l_pad // tl
    n_cols = d_pad // tn

    row_map = lambda i, j: (i, 0)
    col_map = lambda i, j: (0, j)
    out_map = lambda i, j: (i, j)

    grid_spec = pltpu.PrefetchScalarGridSpec(
        num_scalar_prefetch=0,
        grid=(n_rows, n_cols),
        in_specs=[
            pl.BlockSpec((tl, D), row_map),     # hidden_states (caller dtype)
            pl.BlockSpec((tl, D), row_map),     # input_tensor (caller dtype)
            pl.BlockSpec((D, tn), col_map),     # W1^T (bf16, lane-padded)
            pl.BlockSpec((D, tn), col_map),     # W2^T (bf16, lane-padded)
            pl.BlockSpec((1, tn), col_map),     # bias (f32)
        ],
        out_specs=pl.BlockSpec((tl, tn), out_map),
    )

    cost = pl.CostEstimate(
        flops=4 * l_pad * D * d_pad,            # two MXU dots
        transcendentals=l_pad * d_pad,          # gelu tanh/exp stream
        bytes_accessed=(2 * l_pad * D * in_itemsize
                        + l_pad * d_pad * out_itemsize
                        + 2 * D * d_pad * 2 + d_pad * 4),
    )

    out = pl.pallas_call(
        _make_merger_kernel(act_fn),
        out_shape=jax.ShapeDtypeStruct((l_pad, d_pad), out_dtype),
        grid_spec=grid_spec,
        compiler_params=pltpu.CompilerParams(
            dimension_semantics=("parallel", "parallel"),
            vmem_limit_bytes=_vmem_limit_bytes(tl, D, in_itemsize, tn,
                                               out_itemsize)),
        cost_estimate=cost,
    )(hidden_states, input_tensor, w1_t, w2_t, bias)

    if l_pad != L or d_pad != D:
        out = out[:L, :D]
    return out


# ----------------------------- pure-JAX references -----------------------------
def merger_reference_f32(params, hidden_states, input_tensor, act_fn="gelu"):
    x = jnp.concatenate([hidden_states, input_tensor], axis=-1)
    y = x @ params["w"].T + params["b"]
    return _ACTS[act_fn](y)


def merger_reference_bf16(params, hidden_states, input_tensor, act_fn="gelu"):
    """Same math as the kernel (bf16 matmul operands, f32 accumulation)."""
    D = hidden_states.shape[-1]
    w = params["w"].astype(jnp.bfloat16)
    w1_t, w2_t = w[:, :D].T, w[:, D:].T
    y = (jnp.dot(hidden_states.astype(jnp.bfloat16), w1_t,
                 preferred_element_type=jnp.float32)
         + jnp.dot(input_tensor.astype(jnp.bfloat16), w2_t,
                   preferred_element_type=jnp.float32)
         + params["b"].astype(jnp.float32))
    return _ACTS[act_fn](y)


if __name__ == "__main__":
    L, D = 8, 32          # hidden_states: [L1, D] as in the module docstring
    ACT = "gelu"

    key = jax.random.PRNGKey(0)
    k_w, k_b, k_hs, k_it = jax.random.split(key, 4)

    # nn.Linear(2D, D) init convention
    bound = 1.0 / math.sqrt(2 * D)
    params = dict(
        w=jax.random.uniform(k_w, (D, 2 * D), jnp.float32, -bound, bound),
        b=jax.random.uniform(k_b, (D,), jnp.float32, -bound, bound),
    )

    hidden_states = jax.random.normal(k_hs, (L, D), jnp.float32)
    input_tensor = jax.random.normal(k_it, (L, D), jnp.float32)

    # Weight prep hoisted out of the forward path (one-time cost).
    prepared = prepare_merger_params(params)

    out = merger_forward(prepared, hidden_states, input_tensor, act_fn=ACT)
    out = jax.block_until_ready(out)
    assert out.shape == (L, D)
    assert out.dtype == jnp.float32

    # Tight check vs a bf16-consistent reference (same operand precision).
    ref_bf16 = merger_reference_bf16(params, hidden_states, input_tensor, ACT)
    err_bf16 = float(jnp.max(jnp.abs(out - ref_bf16)))
    assert err_bf16 < 1e-3, err_bf16

    # Loose sanity check vs the full-f32 reference (bf16 operand rounding).
    ref_f32 = merger_reference_f32(params, hidden_states, input_tensor, ACT)
    err_f32 = float(jnp.max(jnp.abs(out - ref_f32)))
    assert err_f32 < 5e-2, err_f32

    print("KERNEL_OK")
</pallas_src>

<mosaic_0001>
module attributes {stable_mosaic.version = 11 : i64} {
  func.func @kernel(%arg0: i32, %arg1: i32, %arg2: memref<8x32xf32, #tpu.memory_space<vmem>>, %arg3: memref<8x32xf32, #tpu.memory_space<vmem>>, %arg4: memref<32x128xbf16, #tpu.memory_space<vmem>>, %arg5: memref<32x128xbf16, #tpu.memory_space<vmem>>, %arg6: memref<1x128xf32, #tpu.memory_space<vmem>>, %arg7: memref<8x128xf32, #tpu.memory_space<vmem>>) attributes {dimension_semantics = [#tpu.dimension_semantics<parallel>, #tpu.dimension_semantics<parallel>], iteration_bounds = array<i64: 1, 1>, scalar_prefetch = 0 : i64, scratch_operands = 0 : i64, tpu.core_type = #tpu.core_type<tc>, window_params = [{transform_indices = @transform_0, window_bounds = array<i64: 8, 32>}, {transform_indices = @transform_1, window_bounds = array<i64: 8, 32>}, {transform_indices = @transform_2, window_bounds = array<i64: 32, 128>}, {transform_indices = @transform_3, window_bounds = array<i64: 32, 128>}, {transform_indices = @transform_4, window_bounds = array<i64: 1, 128>}, {transform_indices = @transform_5, window_bounds = array<i64: 8, 128>}]} {
    %c0 = arith.constant 0 : index
    %c0_0 = arith.constant 0 : index
    %0 = vector.load %arg2[%c0, %c0_0] : memref<8x32xf32, #tpu.memory_space<vmem>>, vector<8x32xf32>
    %1 = arith.truncf %0 : vector<8x32xf32> to vector<8x32xbf16>
    %c0_1 = arith.constant 0 : index
    %c0_2 = arith.constant 0 : index
    %2 = vector.load %arg3[%c0_1, %c0_2] : memref<8x32xf32, #tpu.memory_space<vmem>>, vector<8x32xf32>
    %3 = arith.truncf %2 : vector<8x32xf32> to vector<8x32xbf16>
    %c0_3 = arith.constant 0 : index
    %c0_4 = arith.constant 0 : index
    %4 = vector.load %arg4[%c0_3, %c0_4] : memref<32x128xbf16, #tpu.memory_space<vmem>>, vector<32x128xbf16>
    %cst = arith.constant dense<0.000000e+00> : vector<8x128xf32>
    %5 = tpu.matmul %1, %4, %cst {dimension_numbers = #tpu.dot_dimension_numbers<[1], [0], [0], [1], [0, 0, 1, 1], [], []>} : vector<8x32xbf16>, vector<32x128xbf16>, vector<8x128xf32> -> vector<8x128xf32>
    %c0_5 = arith.constant 0 : index
    %c0_6 = arith.constant 0 : index
    %6 = vector.load %arg5[%c0_5, %c0_6] : memref<32x128xbf16, #tpu.memory_space<vmem>>, vector<32x128xbf16>
    %cst_7 = arith.constant dense<0.000000e+00> : vector<8x128xf32>
    %7 = tpu.matmul %3, %6, %cst_7 {dimension_numbers = #tpu.dot_dimension_numbers<[1], [0], [0], [1], [0, 0, 1, 1], [], []>} : vector<8x32xbf16>, vector<32x128xbf16>, vector<8x128xf32> -> vector<8x128xf32>
    %8 = arith.addf %5, %7 : vector<8x128xf32>
    %c0_8 = arith.constant 0 : index
    %c0_9 = arith.constant 0 : index
    %9 = vector.load %arg6[%c0_8, %c0_9] : memref<1x128xf32, #tpu.memory_space<vmem>>, vector<1x128xf32>
    %10 = vector.broadcast %9 : vector<1x128xf32> to vector<8x128xf32>
    %11 = arith.addf %8, %10 : vector<8x128xf32>
    %cst_10 = arith.constant 5.000000e-01 : f32
    %12 = vector.broadcast %cst_10 : f32 to vector<8x128xf32>
    %13 = arith.mulf %12, %11 : vector<8x128xf32>
    %cst_11 = arith.constant 4.471500e-02 : f32
    %14 = vector.broadcast %cst_11 : f32 to vector<8x128xf32>
    %15 = arith.mulf %14, %11 : vector<8x128xf32>
    %16 = arith.mulf %15, %11 : vector<8x128xf32>
    %17 = arith.mulf %16, %11 : vector<8x128xf32>
    %18 = arith.addf %11, %17 : vector<8x128xf32>
    %cst_12 = arith.constant 0.797884583 : f32
    %19 = vector.broadcast %cst_12 : f32 to vector<8x128xf32>
    %20 = arith.mulf %19, %18 : vector<8x128xf32>
    %21 = math.tanh %20 : vector<8x128xf32>
    %cst_13 = arith.constant 1.000000e+00 : f32
    %22 = vector.broadcast %cst_13 : f32 to vector<8x128xf32>
    %23 = arith.addf %22, %21 : vector<8x128xf32>
    %24 = arith.mulf %13, %23 : vector<8x128xf32>
    %c0_14 = arith.constant 0 : index
    %c0_15 = arith.constant 0 : index
    %25 = vector.load %arg7[%c0_14, %c0_15] : memref<8x128xf32, #tpu.memory_space<vmem>>, vector<8x128xf32>
    tpu.vector_store %arg7[%c0_14, %c0_15], %24 {strides = array<i32>} : memref<8x128xf32, #tpu.memory_space<vmem>>, vector<8x128xf32>,
    return
  }
  func.func @transform_0(%arg0: i32, %arg1: i32) -> (i32, i32) {
    %c0_i32 = arith.constant 0 : i32
    %c0_i32_0 = arith.constant 0 : i32
    return %arg0, %c0_i32 : i32, i32
  }
  func.func @transform_1(%arg0: i32, %arg1: i32) -> (i32, i32) {
    %c0_i32 = arith.constant 0 : i32
    %c0_i32_0 = arith.constant 0 : i32
    return %arg0, %c0_i32 : i32, i32
  }
  func.func @transform_2(%arg0: i32, %arg1: i32) -> (i32, i32) {
    %c0_i32 = arith.constant 0 : i32
    %c0_i32_0 = arith.constant 0 : i32
    return %c0_i32, %arg1 : i32, i32
  }
  func.func @transform_3(%arg0: i32, %arg1: i32) -> (i32, i32) {
    %c0_i32 = arith.constant 0 : i32
    %c0_i32_0 = arith.constant 0 : i32
    return %c0_i32, %arg1 : i32, i32
  }
  func.func @transform_4(%arg0: i32, %arg1: i32) -> (i32, i32) {
    %c0_i32 = arith.constant 0 : i32
    %c0_i32_0 = arith.constant 0 : i32
    return %c0_i32, %arg1 : i32, i32
  }
  func.func @transform_5(%arg0: i32, %arg1: i32) -> (i32, i32) {
    %c0_i32 = arith.constant 0 : i32
    return %arg0, %arg1 : i32, i32
  }
}

</mosaic_0001>

<bundles_post_ra>
// kernel: tpu_custom_call.1
= control target key start
LH: loop header
LB: loop body
LE: loop exit
PB: predicated region body
PF: predicated region fallthrough
CT: control target
= control target key end

     0   :  { %10 = vsyncpa [#allocation3], 0  ;;  %s495_s0 = inlined_call_operand.hbm [shape: f32[8,32], index: 0, kind: input, shape index: {}]   ;;  %s496_s1 = inlined_call_operand.hbm [shape: f32[8,32], index: 1, kind: input, shape index: {}]   ;;  %s497_s2 = inlined_call_operand.hbm [shape: bf16[32,128], index: 2, kind: input, shape index: {}]   ;;  %s498_s3 = inlined_call_operand.hbm [shape: bf16[32,128], index: 3, kind: input, shape index: {}]   ;;  %s499_s4 = inlined_call_operand.vmem [shape: f32[1,128], index: 4, kind: input, shape index: {}]   ;;  %s500_s5 = inlined_call_operand.hbm [shape: f32[8,128], index: 5, kind: output, shape index: {}]  }
   0x1   :  { %11 = vsyncpa [#allocation6], 0 }
   0x2   :  { %12 = vsyncpa [#allocation9], 0 }
   0x3   :  { %13 = vsyncpa [#allocation4], 0  ;;  %s393_s18 = smov [#allocation5]   ;;  %s394_s20 = smov [#allocation2]  }
   0x4   :  { %s30_s19 = sshll.u32 %s393_s18, 4  ;;  %s20_s21 = sshll.u32 %s394_s20, 4  ;;  %s31_s19 = int_to_ptr.vmem [resolvable:$true] %s30_s19  ;;  %s21_s21 = int_to_ptr.vmem [resolvable:$true] %s20_s21 }
   0x5   :  { %s275_s24 = scalar_lea.hbm %s496_s1, 128 }
   0x6   :  { %p276_p0 = scmp.ne.s32.totalorder %s496_s1, %s275_s24  ;;  %p279_p1 = scmp.lt.u32.totalorder %s275_s24, %s496_s1 }
   0x8   :  { %p281_p2 = pnand %p279_p1, %p276_p0 }
   0xa   :  { %284 = shalt.err (!%p281_p2)
}
   0xb   :  { %s285_s29 = scalar_lea.vmem %s31_s19, 128  ;;  %p290_p4 = scmp.lt.s32.totalorder %s31_s19, %s31_s19 }
   0xc   :  { %p286_p3 = scmp.ne.s32.totalorder %s31_s19, %s285_s29  ;;  %p291_p5 = scmp.lt.s32.totalorder %s285_s29, %s285_s29 }
   0xe   :  { %p292_p6 = por %p291_p5, %p290_p4 }
  0x10   :  { %p293_p7 = pnand %p292_p6, %p286_p3 }
  0x12   :  { %296 = shalt.err (!%p293_p7)
}
  0x13   :  { %33 = dma.hbm_to_vmem [thread:$0]  %s496_s1, 128, %s31_s19, [#allocation6]  }
  0x14   :  { %s297_s9 = scalar_lea.hbm %s495_s0, 128 }
  0x15   :  { %p298_p8 = scmp.ne.s32.totalorder %s495_s0, %s297_s9  ;;  %p301_p9 = scmp.lt.u32.totalorder %s297_s9, %s495_s0 }
  0x17   :  { %p303_p10 = pnand %p301_p9, %p298_p8 }
  0x19   :  { %306 = shalt.err (!%p303_p10)
}
  0x1a   :  { %s307_s14 = scalar_lea.vmem %s21_s21, 128  ;;  %p312_p12 = scmp.lt.s32.totalorder %s21_s21, %s21_s21 }
  0x1b   :  { %p308_p11 = scmp.ne.s32.totalorder %s21_s21, %s307_s14  ;;  %p313_p13 = scmp.lt.s32.totalorder %s307_s14, %s307_s14 }
  0x1d   :  { %p314_p0 = por %p313_p13, %p312_p12 }
  0x1f   :  { %p315_p1 = pnand %p314_p0, %p308_p11 }
  0x21   :  { %318 = shalt.err (!%p315_p1)
}
  0x22   :  { %23 = dma.hbm_to_vmem [thread:$0]  %s495_s0, 128, %s21_s21, [#allocation3]  }
  0x23   :  { %s395_s16 = smov [#allocation7]   ;;  %s319_s20 = scalar_lea.hbm %s497_s2, 256 }
  0x24   :  { %s39_s17 = sshll.u32 %s395_s16, 4  ;;  %p320_p2 = scmp.ne.s32.totalorder %s497_s2, %s319_s20  ;;  %s40_s17 = int_to_ptr.vmem [resolvable:$true] %s39_s17 }
  0x25   :  { %p323_p3 = scmp.lt.u32.totalorder %s319_s20, %s497_s2 }
  0x27   :  { %p325_p4 = pnand %p323_p3, %p320_p2 }
  0x29   :  { %328 = shalt.err (!%p325_p4)
}
  0x2a   :  { %s329_s26 = scalar_lea.vmem %s40_s17, 256  ;;  %p334_p6 = scmp.lt.s32.totalorder %s40_s17, %s40_s17 }
  0x2b   :  { %p330_p5 = scmp.ne.s32.totalorder %s40_s17, %s329_s26  ;;  %p335_p7 = scmp.lt.s32.totalorder %s329_s26, %s329_s26 }
  0x2d   :  { %p336_p8 = por %p335_p7, %p334_p6 }
  0x2f   :  { %p337_p9 = pnand %p336_p8, %p330_p5 }
  0x31   :  { %340 = shalt.err (!%p337_p9)
}
  0x32   :  { %s396_s0 = smov 64   ;;  %s397_s21 = smov 4  }
  0x33   :  { %45 = dma.hbm_to_vmem [thread:$0]  %s497_s2, 256, %s40_s17, [#allocation6], %s396_s0, %s396_s0, %s397_s21  }
  0x34   :  { %s398_s29 = smov [#allocation8]   ;;  %s341_s8 = scalar_lea.hbm %s498_s3, 256 }
  0x35   :  { %s51_s30 = sshll.u32 %s398_s29, 4  ;;  %p342_p10 = scmp.ne.s32.totalorder %s498_s3, %s341_s8  ;;  %s52_s30 = int_to_ptr.vmem [resolvable:$true] %s51_s30 }
  0x36   :  { %p345_p11 = scmp.lt.u32.totalorder %s341_s8, %s498_s3 }
  0x38   :  { %p347_p12 = pnand %p345_p11, %p342_p10 }
  0x3a   :  { %350 = shalt.err (!%p347_p12)
}
  0x3b   :  { %s351_s13 = scalar_lea.vmem %s52_s30, 256  ;;  %p356_p0 = scmp.lt.s32.totalorder %s52_s30, %s52_s30 }
  0x3c   :  { %p352_p13 = scmp.ne.s32.totalorder %s52_s30, %s351_s13  ;;  %p357_p1 = scmp.lt.s32.totalorder %s351_s13, %s351_s13 }
  0x3e   :  { %p358_p2 = por %p357_p1, %p356_p0 }
  0x40   :  { %p359_p3 = pnand %p358_p2, %p352_p13 }
  0x42   :  { %362 = shalt.err (!%p359_p3)
}
  0x43   :  { %57 = dma.hbm_to_vmem [thread:$0]  %s498_s3, 256, %s52_s30, [#allocation9], %s396_s0, %s396_s0, %s397_s21  }
  0x44   :  { %385 = dma.done.wait [#allocation3], 128  }
  0x45   :  { %386 = vsyncadd [#allocation3], 4294967168 }
  0x46   :  { %387 = dma.done.wait [#allocation6], 384  }
  0x47   :  { %388 = vsyncadd [#allocation6], 4294966912 }
  0x48   :  { %389 = dma.done.wait [#allocation9], 256  }
  0x49   :  { %390 = vsyncadd [#allocation9], 4294967040  ;;  %v399_v0 = vmov 0.0   ;;  %vm400_vm0 = vmmov 0   ;;  %v269_v1 = vld [vmem:[#allocation8] sm:$0xff]   ;;  %v270_v2 = vld [vmem:[#allocation7] sm:$0xff]  }
  0x4a   :  { %244 = vmatprep.subr.bf16.mxu0 %v399_v0  ;;  %252 = vmatprep.subr.bf16.mxu1 %v399_v0  ;;  %v271_v3 = vld [vmem:[#allocation8 + $0x8] sm:$0xff]   ;;  %v272_v4 = vld [vmem:[#allocation7 + $0x8] sm:$0xff]   ;;  %v73_v6 = vld [vmem:[#allocation2] sm:$0xff]  ;;  %vm97_vm1 = vcmask 261120   ;;  %s401_s15 = smov [#allocation10]  }
  0x4b   :  { %248 = vmatprep.mubr.msk.bf16.mxu0 %vm400_vm0, %v399_v0  ;;  %256 = vmatprep.mubr.msk.bf16.mxu1 %vm400_vm0, %v399_v0  ;;  %v75_v5 = vld [vmem:[#allocation5] sm:$0xff]  ;;  %v74_v8 = vpack.c.bf16 %v73_v6, %v73_v6  ;;  %v237_v11 = vld [vmem:[%s499_s4] ss:$0 sm:$0xff]  ;;  %s220_s16 = sshll.u32 %s401_s15, 4  ;;  %s221_s16 = int_to_ptr.vmem [resolvable:$true] %s220_s16 }
  0x4c   :  { %245 = vmatpush3.bf16.msra.mxu0 %v269_v1  ;;  %253 = vmatpush3.bf16.msra.mxu1 %v270_v2  ;;  %v76_v7 = vpack.c.bf16 %v75_v5, %v75_v5  ;;  %s363_s4 = scalar_lea.vmem %s221_s16, 128  ;;  %p368_p5 = scmp.lt.s32.totalorder %s221_s16, %s221_s16 }
  0x4d   :  { %246 = vmatprep.subr.bf16.mxu0 %v399_v0  ;;  %254 = vmatprep.subr.bf16.mxu1 %v399_v0  ;;  %p364_p4 = scmp.ne.s32.totalorder %s221_s16, %s363_s4  ;;  %p369_p6 = scmp.lt.s32.totalorder %s363_s4, %s363_s4 }
  0x4f   :  { %p370_p7 = por %p369_p6, %p368_p5 }
  0x50   :  { %247 = vmatpush3.bf16.msra.mxu0 %v271_v3  ;;  %255 = vmatpush3.bf16.msra.mxu1 %v272_v4 }
  0x51   :  { %p371_p8 = pnand %p370_p7, %p364_p4 }
  0x53   :  { %249 = vmatmul.mubr.msk.bf16.vlgmr.msra.gmra.mrb[0].mxu0 %vm97_vm1, %v76_v7  ;;  %257 = vmatmul.mubr.msk.bf16.vlgmr.msra.gmra.mrb[0].mxu1 %vm97_vm1, %v74_v8 }
 0x126   :  { %v135_v9 = vpop.f32.mrb[0].mxu0  ;;  %v190_v10 = vpop.f32.mrb[0].mxu1 }
 0x127   :  { %v250_v12 = vpop.f32.mrb[1].mxu0  ;;  %v191_v13 = vadd.f32 %v190_v10, %v135_v9  ;;  %v258_v14 = vpop.f32.mrb[1].mxu1 }
 0x128   :  { %v138_v15 = vpop.f32.mrb[2].mxu0  ;;  %v193_v16 = vpop.f32.mrb[2].mxu1 }
 0x129   :  { %v251_v17 = vpop.f32.mrb[3].mxu0  ;;  %v203_v18 = vadd.f32 %v237_v11, %v191_v13  ;;  %v259_v19 = vpop.f32.mrb[3].mxu1 }
 0x12b   :  { %v205_v20 = vmul.f32 0.044715, %v203_v18  ;;  %v204_v26 = vmul.f32 0.5, %v203_v18 }
 0x12d   :  { %v206_v21 = vmul.f32 %v205_v20, %v203_v18 }
 0x12f   :  { %v207_v22 = vmul.f32 %v206_v21, %v203_v18 }
 0x131   :  { %v208_v23 = vadd.f32 %v207_v22, %v203_v18 }
 0x133   :  { %v209_v24 = vmul.f32 0.7978846, %v208_v23 }
 0x135   :  { %273 = vtanh.f32 %v209_v24 }
 0x13f   :  { %v274_v25 = vpop.eup %273 }
 0x140   :  { %v211_v27 = vadd.f32 1.0, %v274_v25 }
 0x142   :  { %v212_v28 = vmul.f32 %v211_v27, %v204_v26 }
 0x144   :  { %213 = vst [vmem:[#allocation10] sm:$0xff] %v212_v28 }
 0x145   :  { %374 = shalt.err (!%p371_p8)
}
 0x146   :  { %s375_s19 = scalar_lea.hbm %s500_s5, 128 }
 0x147   :  { %p376_p9 = scmp.ne.s32.totalorder %s500_s5, %s375_s19  ;;  %p379_p10 = scmp.lt.u32.totalorder %s375_s19, %s500_s5 }
 0x149   :  { %p381_p11 = pnand %p379_p10, %p376_p9 }
 0x14b   :  { %384 = shalt.err (!%p381_p11)
}
 0x14c   :  { %223 = dma.vmem_to_hbm [thread:$0]  %s221_s16, 128, %s500_s5, [#allocation4]  }
 0x14d   :  { %391 = dma.done.wait [#allocation4], 128  }
 0x14e   :  { %392 = vsyncadd [#allocation4], 4294967168 }
 0x14f   :  { %227 = vsyncpa [#allocation3], 1 }
 0x150   :  { %228 = vsyncpa [#allocation6], 1 }
 0x151   :  { %229 = vsyncpa [#allocation9], 1 }
 0x152   :  { %230 = vsyncpa [#allocation4], 1 }

</bundles_post_ra>
